<compile_context>
chip_gen: v5e
topology: v5e:2x2
jax: 0.10.0
libtpu: 0.0.40
codegen_flags: <defaults>
</compile_context>

<pallas_src>
import functools
import math

import jax
import jax.numpy as jnp
from jax import lax
from jax.experimental import pallas as pl
from jax.experimental.pallas import tpu as pltpu


# Only split the batch across grid steps (and v7x TensorCores) when each block
# has enough rows to amortize the fixed per-step pipeline overhead.
_MIN_ROWS_PER_SPLIT = 256
# Above this D, the masked full-(D,D) K^T V over-computes by a factor of H that
# the 128-lane MXU tile no longer hides; fall back to per-head products.
_MASKED_KV_MAX_D = 128


def encoder_block_kernel(x_ref, wq_ref, wk_ref, wv_ref, hmask_ref,
                         w1_ref, b1_ref, w2_ref, b2_ref, out_ref, attn_ref,
                         *, batch_block, seq_len, num_heads, use_masked_kv):
    """One grid step processes `batch_block` batches, rows fused as (BB*S, D)."""
    S = seq_len
    x = x_ref[...]                                            # (BB*S, D)
    D = x.shape[1]
    hd = D // num_heads

    # Fused Q/K/V projections over all rows of the block.  The 1/sqrt(head_dim)
    # scale is already folded into wq (done once in prepare_params).
    q = jnp.dot(x, wq_ref[...], preferred_element_type=jnp.float32)
    k = jnp.dot(x, wk_ref[...], preferred_element_type=jnp.float32)
    v = jnp.dot(x, wv_ref[...], preferred_element_type=jnp.float32)

    # No-softmax attention, re-associated:  out_h = (Q_h*scale) @ (K_h^T @ V_h).
    # Per-batch results are written directly into the VMEM scratch (sublane-
    # aligned row blocks), so no sublane-axis concat is ever materialized.
    for bi in range(batch_block):                             # static, tiny
        r0 = bi * S
        qb = q[r0:r0 + S, :]                                  # (S, D)
        kb = k[r0:r0 + S, :]
        vb = v[r0:r0 + S, :]
        if use_masked_kv:
            # All heads at once: full (D,D) K^T V masked to the per-head block
            # diagonal (exact, since there is no softmax).  dot_general
            # contracts on the leading axis, so no kb.T transpose is built.
            kv = lax.dot_general(kb, vb, (((0,), (0,)), ((), ())),
                                 preferred_element_type=jnp.float32)   # (D, D)
            kv = kv * hmask_ref[...]
            attn_b = jnp.dot(qb, kv, preferred_element_type=jnp.float32)
        else:
            # Scaling fallback for D >= 128: per-head (hd, hd) K_h^T V_h avoids
            # the H-fold FLOP blow-up of the masked full-D product.
            parts = []
            for h in range(num_heads):
                c0 = h * hd
                kvh = lax.dot_general(kb[:, c0:c0 + hd], vb[:, c0:c0 + hd],
                                      (((0,), (0,)), ((), ())),
                                      preferred_element_type=jnp.float32)
                parts.append(jnp.dot(qb[:, c0:c0 + hd], kvh,
                                     preferred_element_type=jnp.float32))
            attn_b = jnp.concatenate(parts, axis=-1)
        attn_ref[r0:r0 + S, :] = attn_b                       # sublane-aligned

    # Dropout(p=0) is identity.  FFN runs once over the whole scratch:
    # Linear -> ReLU -> Linear.
    attn = attn_ref[...]
    h1 = jnp.dot(attn, w1_ref[...], preferred_element_type=jnp.float32) + b1_ref[...]
    h1 = jnp.maximum(h1, 0.0)
    out = jnp.dot(h1, w2_ref[...], preferred_element_type=jnp.float32) + b2_ref[...]
    out_ref[...] = out.astype(out_ref.dtype)


def prepare_params(wqkv, w1, b1, w2, b2, *, num_heads):
    """One-time weight preprocessing, hoisted out of the per-call path.

    NOTE: assumes the tutorial-style ModifiedMultiheadAttention qkv layout
    (rows interleaved per head as [q|k|v]), NOT torch.nn.MultiheadAttention's
    stacked [Wq; Wk; Wv] layout.
    """
    three_d, D = wqkv.shape
    assert three_d == 3 * D, "qkv_proj weight must be (3*D, D)"
    assert D % num_heads == 0, "embed_dim must be divisible by num_heads"
    head_dim = D // num_heads
    scale = 1.0 / math.sqrt(head_dim)
    Fdim = w1.shape[0]

    w_r = wqkv.reshape(num_heads, 3, head_dim, D)
    wq_t = (w_r[:, 0].reshape(D, D).T * scale).astype(jnp.float32)  # scale folded in
    wk_t = w_r[:, 1].reshape(D, D).T.astype(jnp.float32)
    wv_t = w_r[:, 2].reshape(D, D).T.astype(jnp.float32)

    head_ids = jnp.arange(D) // head_dim
    hmask = (head_ids[:, None] == head_ids[None, :]).astype(jnp.float32)

    return dict(wq_t=wq_t, wk_t=wk_t, wv_t=wv_t, hmask=hmask,
                w1_t=w1.T.astype(jnp.float32), b1=b1.reshape(1, Fdim),
                w2_t=w2.T.astype(jnp.float32), b2=b2.reshape(1, D))


@functools.partial(jax.jit, static_argnums=(2,))
def modified_encoder_block(x, params, num_heads):
    """x: (B, S, D); params: output of prepare_params; num_heads static."""
    B, S, D = x.shape
    Fdim = params["w1_t"].shape[1]

    # Split the batch two ways only when each half carries enough rows to
    # amortize the fixed per-grid-step overhead (and stays sublane-divisible).
    # At B=2, S=8 this collapses to a single grid step; at large B*S it becomes
    # a "parallel" axis for the v7x 2-TC megacore.
    half_rows = (B // 2) * S
    n_blocks = 2 if (B % 2 == 0 and half_rows >= _MIN_ROWS_PER_SPLIT
                     and half_rows % 8 == 0) else 1
    bb = B // n_blocks
    rows = bb * S

    use_masked_kv = D < _MASKED_KV_MAX_D

    # TODO(synk): at much larger B*S, present a lane-dense (B*S*D/128, 128) HBM
    # slab for x/out instead of (rows, D) with D=32 to avoid masked vst.msk
    # stores; irrelevant for the ~2 KiB output here.
    x2d = x.reshape(B * S, D)   # free, row-major; fused rows for the matmuls

    kernel = functools.partial(encoder_block_kernel,
                               batch_block=bb, seq_len=S,
                               num_heads=num_heads,
                               use_masked_kv=use_masked_kv)

    out2d = pl.pallas_call(
        kernel,
        out_shape=jax.ShapeDtypeStruct((B * S, D), x.dtype),
        grid_spec=pltpu.PrefetchScalarGridSpec(
            num_scalar_prefetch=0,
            grid=(n_blocks,),
            in_specs=[
                pl.BlockSpec((rows, D), lambda i: (i, 0)),     # x rows (per block)
                pl.BlockSpec((D, D), lambda i: (0, 0)),        # Wq^T * scale
                pl.BlockSpec((D, D), lambda i: (0, 0)),        # Wk^T
                pl.BlockSpec((D, D), lambda i: (0, 0)),        # Wv^T
                pl.BlockSpec((D, D), lambda i: (0, 0)),        # per-head block mask
                pl.BlockSpec((D, Fdim), lambda i: (0, 0)),     # W1^T
                pl.BlockSpec((1, Fdim), lambda i: (0, 0)),     # b1
                pl.BlockSpec((Fdim, D), lambda i: (0, 0)),     # W2^T
                pl.BlockSpec((1, D), lambda i: (0, 0)),        # b2
            ],
            out_specs=pl.BlockSpec((rows, D), lambda i: (i, 0)),
            scratch_shapes=[pltpu.VMEM((rows, D), jnp.float32)],  # attn scratch
        ),
        compiler_params=pltpu.CompilerParams(
            dimension_semantics=(
                ("parallel",) if n_blocks > 1 else ("arbitrary",))),
    )(x2d, params["wq_t"], params["wk_t"], params["wv_t"], params["hmask"],
      params["w1_t"], params["b1"], params["w2_t"], params["b2"])

    return out2d.reshape(B, S, D)


def reference(x, wqkv, w1, b1, w2, b2, num_heads):
    """Pure-JAX replica of the PyTorch forward (correctness check)."""
    B, S, D = x.shape
    hd = D // num_heads
    qkv = jnp.einsum('bsd,ed->bse', x, wqkv)
    qkv = qkv.reshape(B, S, num_heads, 3 * hd).transpose(0, 2, 1, 3)
    q, k, v = jnp.split(qkv, 3, axis=-1)
    logits = jnp.einsum('bhqd,bhkd->bhqk', q, k) / math.sqrt(hd)
    vals = jnp.einsum('bhqk,bhkd->bhqd', logits, v)
    vals = vals.transpose(0, 2, 1, 3).reshape(B, S, D)
    h1 = jnp.maximum(jnp.einsum('bsd,fd->bsf', vals, w1) + b1, 0.0)
    return jnp.einsum('bsf,df->bsd', h1, w2) + b2


if __name__ == "__main__":
    B, S, D = 2, 8, 32          # batch, seq, input_dim (= embed_dim)
    H = 4                       # num_heads -> head_dim = 8
    Fdim = 64                   # dim_feedforward

    key = jax.random.PRNGKey(0)
    kx, kqkv, kw1, kb1, kw2, kb2 = jax.random.split(key, 6)

    x = jax.random.normal(kx, (B, S, D), dtype=jnp.float32)

    # Deterministic parameter init (shapes follow the PyTorch module).
    xav = math.sqrt(6.0 / (D + 3 * D))
    wqkv = jax.random.uniform(kqkv, (3 * D, D), minval=-xav, maxval=xav,
                              dtype=jnp.float32)
    b1_bound = 1.0 / math.sqrt(D)
    w1 = jax.random.uniform(kw1, (Fdim, D), minval=-b1_bound, maxval=b1_bound,
                            dtype=jnp.float32)
    b1 = jax.random.uniform(kb1, (Fdim,), minval=-b1_bound, maxval=b1_bound,
                            dtype=jnp.float32)
    b2_bound = 1.0 / math.sqrt(Fdim)
    w2 = jax.random.uniform(kw2, (D, Fdim), minval=-b2_bound, maxval=b2_bound,
                            dtype=jnp.float32)
    b2 = jax.random.uniform(kb2, (D,), minval=-b2_bound, maxval=b2_bound,
                            dtype=jnp.float32)

    # One-time weight preprocessing (hoisted out of the per-call path).
    params = prepare_params(wqkv, w1, b1, w2, b2, num_heads=H)
    params = jax.tree_util.tree_map(jax.block_until_ready, params)

    out = modified_encoder_block(x, params, H)
    out = jax.block_until_ready(out)

    ref = reference(x, wqkv, w1, b1, w2, b2, H)
    assert out.shape == (B, S, D)
    assert jnp.allclose(out, ref, atol=1e-4, rtol=1e-4), (
        f"max abs err {jnp.max(jnp.abs(out - ref))}")

    print("KERNEL_OK")
</pallas_src>

<mosaic_0001>
module attributes {stable_mosaic.version = 11 : i64} {
  func.func @encoder_block_kernel(%arg0: i32, %arg1: memref<16x32xf32, #tpu.memory_space<vmem>>, %arg2: memref<32x32xf32, #tpu.memory_space<vmem>>, %arg3: memref<32x32xf32, #tpu.memory_space<vmem>>, %arg4: memref<32x32xf32, #tpu.memory_space<vmem>>, %arg5: memref<32x32xf32, #tpu.memory_space<vmem>>, %arg6: memref<32x64xf32, #tpu.memory_space<vmem>>, %arg7: memref<1x64xf32, #tpu.memory_space<vmem>>, %arg8: memref<64x32xf32, #tpu.memory_space<vmem>>, %arg9: memref<1x32xf32, #tpu.memory_space<vmem>>, %arg10: memref<16x32xf32, #tpu.memory_space<vmem>>, %arg11: memref<16x32xf32, #tpu.memory_space<vmem>>) attributes {dimension_semantics = [#tpu.dimension_semantics<arbitrary>], iteration_bounds = array<i64: 1>, scalar_prefetch = 0 : i64, scratch_operands = 1 : i64, tpu.core_type = #tpu.core_type<tc>, window_params = [{transform_indices = @transform_0, window_bounds = array<i64: 16, 32>}, {pipeline_mode = #tpu.pipeline_mode<synchronous>, transform_indices = @transform_1, window_bounds = array<i64: 32, 32>}, {pipeline_mode = #tpu.pipeline_mode<synchronous>, transform_indices = @transform_2, window_bounds = array<i64: 32, 32>}, {pipeline_mode = #tpu.pipeline_mode<synchronous>, transform_indices = @transform_3, window_bounds = array<i64: 32, 32>}, {pipeline_mode = #tpu.pipeline_mode<synchronous>, transform_indices = @transform_4, window_bounds = array<i64: 32, 32>}, {pipeline_mode = #tpu.pipeline_mode<synchronous>, transform_indices = @transform_5, window_bounds = array<i64: 32, 64>}, {pipeline_mode = #tpu.pipeline_mode<synchronous>, transform_indices = @transform_6, window_bounds = array<i64: 1, 64>}, {pipeline_mode = #tpu.pipeline_mode<synchronous>, transform_indices = @transform_7, window_bounds = array<i64: 64, 32>}, {pipeline_mode = #tpu.pipeline_mode<synchronous>, transform_indices = @transform_8, window_bounds = array<i64: 1, 32>}, {transform_indices = @transform_9, window_bounds = array<i64: 16, 32>}]} {
    %c0 = arith.constant 0 : index
    %c0_0 = arith.constant 0 : index
    %0 = vector.load %arg1[%c0, %c0_0] : memref<16x32xf32, #tpu.memory_space<vmem>>, vector<16x32xf32>
    %c0_1 = arith.constant 0 : index
    %c0_2 = arith.constant 0 : index
    %1 = vector.load %arg2[%c0_1, %c0_2] : memref<32x32xf32, #tpu.memory_space<vmem>>, vector<32x32xf32>
    %cst = arith.constant dense<0.000000e+00> : vector<16x32xf32>
    %2 = tpu.matmul %0, %1, %cst {dimension_numbers = #tpu.dot_dimension_numbers<[1], [0], [0], [1], [0, 0, 1, 1], [], []>} : vector<16x32xf32>, vector<32x32xf32>, vector<16x32xf32> -> vector<16x32xf32>
    %c0_3 = arith.constant 0 : index
    %c0_4 = arith.constant 0 : index
    %3 = vector.load %arg3[%c0_3, %c0_4] : memref<32x32xf32, #tpu.memory_space<vmem>>, vector<32x32xf32>
    %cst_5 = arith.constant dense<0.000000e+00> : vector<16x32xf32>
    %4 = tpu.matmul %0, %3, %cst_5 {dimension_numbers = #tpu.dot_dimension_numbers<[1], [0], [0], [1], [0, 0, 1, 1], [], []>} : vector<16x32xf32>, vector<32x32xf32>, vector<16x32xf32> -> vector<16x32xf32>
    %c0_6 = arith.constant 0 : index
    %c0_7 = arith.constant 0 : index
    %5 = vector.load %arg4[%c0_6, %c0_7] : memref<32x32xf32, #tpu.memory_space<vmem>>, vector<32x32xf32>
    %cst_8 = arith.constant dense<0.000000e+00> : vector<16x32xf32>
    %6 = tpu.matmul %0, %5, %cst_8 {dimension_numbers = #tpu.dot_dimension_numbers<[1], [0], [0], [1], [0, 0, 1, 1], [], []>} : vector<16x32xf32>, vector<32x32xf32>, vector<16x32xf32> -> vector<16x32xf32>
    %7 = vector.extract_strided_slice %2 {offsets = [0, 0], sizes = [8, 32], strides = [1, 1]} : vector<16x32xf32> to vector<8x32xf32>
    %8 = vector.extract_strided_slice %4 {offsets = [0, 0], sizes = [8, 32], strides = [1, 1]} : vector<16x32xf32> to vector<8x32xf32>
    %9 = vector.extract_strided_slice %6 {offsets = [0, 0], sizes = [8, 32], strides = [1, 1]} : vector<16x32xf32> to vector<8x32xf32>
    %cst_9 = arith.constant dense<0.000000e+00> : vector<32x32xf32>
    %10 = tpu.matmul %8, %9, %cst_9 {dimension_numbers = #tpu.dot_dimension_numbers<[0], [0], [1], [1], [0, 1, 1, 1], [], []>} : vector<8x32xf32>, vector<8x32xf32>, vector<32x32xf32> -> vector<32x32xf32>
    %c0_10 = arith.constant 0 : index
    %c0_11 = arith.constant 0 : index
    %11 = vector.load %arg5[%c0_10, %c0_11] : memref<32x32xf32, #tpu.memory_space<vmem>>, vector<32x32xf32>
    %12 = arith.mulf %10, %11 : vector<32x32xf32>
    %cst_12 = arith.constant dense<0.000000e+00> : vector<8x32xf32>
    %13 = tpu.matmul %7, %12, %cst_12 {dimension_numbers = #tpu.dot_dimension_numbers<[1], [0], [0], [1], [0, 0, 1, 1], [], []>} : vector<8x32xf32>, vector<32x32xf32>, vector<8x32xf32> -> vector<8x32xf32>
    %c0_13 = arith.constant 0 : index
    %c0_14 = arith.constant 0 : index
    %14 = vector.load %arg11[%c0_13, %c0_14] : memref<16x32xf32, #tpu.memory_space<vmem>>, vector<8x32xf32>
    tpu.vector_store %arg11[%c0_13, %c0_14], %13 {strides = array<i32>} : memref<16x32xf32, #tpu.memory_space<vmem>>, vector<8x32xf32>,
    %15 = vector.extract_strided_slice %2 {offsets = [8, 0], sizes = [8, 32], strides = [1, 1]} : vector<16x32xf32> to vector<8x32xf32>
    %16 = vector.extract_strided_slice %4 {offsets = [8, 0], sizes = [8, 32], strides = [1, 1]} : vector<16x32xf32> to vector<8x32xf32>
    %17 = vector.extract_strided_slice %6 {offsets = [8, 0], sizes = [8, 32], strides = [1, 1]} : vector<16x32xf32> to vector<8x32xf32>
    %cst_15 = arith.constant dense<0.000000e+00> : vector<32x32xf32>
    %18 = tpu.matmul %16, %17, %cst_15 {dimension_numbers = #tpu.dot_dimension_numbers<[0], [0], [1], [1], [0, 1, 1, 1], [], []>} : vector<8x32xf32>, vector<8x32xf32>, vector<32x32xf32> -> vector<32x32xf32>
    %c0_16 = arith.constant 0 : index
    %c0_17 = arith.constant 0 : index
    %19 = vector.load %arg5[%c0_16, %c0_17] : memref<32x32xf32, #tpu.memory_space<vmem>>, vector<32x32xf32>
    %20 = arith.mulf %18, %19 : vector<32x32xf32>
    %cst_18 = arith.constant dense<0.000000e+00> : vector<8x32xf32>
    %21 = tpu.matmul %15, %20, %cst_18 {dimension_numbers = #tpu.dot_dimension_numbers<[1], [0], [0], [1], [0, 0, 1, 1], [], []>} : vector<8x32xf32>, vector<32x32xf32>, vector<8x32xf32> -> vector<8x32xf32>
    %c8 = arith.constant 8 : index
    %c0_19 = arith.constant 0 : index
    %22 = vector.load %arg11[%c8, %c0_19] : memref<16x32xf32, #tpu.memory_space<vmem>>, vector<8x32xf32>
    tpu.vector_store %arg11[%c8, %c0_19], %21 {strides = array<i32>} : memref<16x32xf32, #tpu.memory_space<vmem>>, vector<8x32xf32>,
    %c0_20 = arith.constant 0 : index
    %c0_21 = arith.constant 0 : index
    %23 = vector.load %arg11[%c0_20, %c0_21] : memref<16x32xf32, #tpu.memory_space<vmem>>, vector<16x32xf32>
    %c0_22 = arith.constant 0 : index
    %c0_23 = arith.constant 0 : index
    %24 = vector.load %arg6[%c0_22, %c0_23] : memref<32x64xf32, #tpu.memory_space<vmem>>, vector<32x64xf32>
    %cst_24 = arith.constant dense<0.000000e+00> : vector<16x64xf32>
    %25 = tpu.matmul %23, %24, %cst_24 {dimension_numbers = #tpu.dot_dimension_numbers<[1], [0], [0], [1], [0, 0, 1, 1], [], []>} : vector<16x32xf32>, vector<32x64xf32>, vector<16x64xf32> -> vector<16x64xf32>
    %c0_25 = arith.constant 0 : index
    %c0_26 = arith.constant 0 : index
    %26 = vector.load %arg7[%c0_25, %c0_26] : memref<1x64xf32, #tpu.memory_space<vmem>>, vector<1x64xf32>
    %27 = vector.broadcast %26 : vector<1x64xf32> to vector<16x64xf32>
    %28 = arith.addf %25, %27 : vector<16x64xf32>
    %cst_27 = arith.constant 0.000000e+00 : f32
    %29 = vector.broadcast %cst_27 : f32 to vector<16x64xf32>
    %30 = arith.maximumf %28, %29 : vector<16x64xf32>
    %c0_28 = arith.constant 0 : index
    %c0_29 = arith.constant 0 : index
    %31 = vector.load %arg8[%c0_28, %c0_29] : memref<64x32xf32, #tpu.memory_space<vmem>>, vector<64x32xf32>
    %cst_30 = arith.constant dense<0.000000e+00> : vector<16x32xf32>
    %32 = tpu.matmul %30, %31, %cst_30 {dimension_numbers = #tpu.dot_dimension_numbers<[1], [0], [0], [1], [0, 0, 1, 1], [], []>} : vector<16x64xf32>, vector<64x32xf32>, vector<16x32xf32> -> vector<16x32xf32>
    %c0_31 = arith.constant 0 : index
    %c0_32 = arith.constant 0 : index
    %33 = vector.load %arg9[%c0_31, %c0_32] : memref<1x32xf32, #tpu.memory_space<vmem>>, vector<1x32xf32>
    %34 = vector.broadcast %33 : vector<1x32xf32> to vector<16x32xf32>
    %35 = arith.addf %32, %34 : vector<16x32xf32>
    %c0_33 = arith.constant 0 : index
    %c0_34 = arith.constant 0 : index
    %36 = vector.load %arg10[%c0_33, %c0_34] : memref<16x32xf32, #tpu.memory_space<vmem>>, vector<16x32xf32>
    tpu.vector_store %arg10[%c0_33, %c0_34], %35 {strides = array<i32>} : memref<16x32xf32, #tpu.memory_space<vmem>>, vector<16x32xf32>,
    return
  }
  func.func @transform_0(%arg0: i32) -> (i32, i32) {
    %c0_i32 = arith.constant 0 : i32
    %c0_i32_0 = arith.constant 0 : i32
    return %arg0, %c0_i32 : i32, i32
  }
  func.func @transform_1(%arg0: i32) -> (i32, i32) {
    %c0_i32 = arith.constant 0 : i32
    %c0_i32_0 = arith.constant 0 : i32
    %c0_i32_1 = arith.constant 0 : i32
    return %c0_i32, %c0_i32_0 : i32, i32
  }
  func.func @transform_2(%arg0: i32) -> (i32, i32) {
    %c0_i32 = arith.constant 0 : i32
    %c0_i32_0 = arith.constant 0 : i32
    %c0_i32_1 = arith.constant 0 : i32
    return %c0_i32, %c0_i32_0 : i32, i32
  }
  func.func @transform_3(%arg0: i32) -> (i32, i32) {
    %c0_i32 = arith.constant 0 : i32
    %c0_i32_0 = arith.constant 0 : i32
    %c0_i32_1 = arith.constant 0 : i32
    return %c0_i32, %c0_i32_0 : i32, i32
  }
  func.func @transform_4(%arg0: i32) -> (i32, i32) {
    %c0_i32 = arith.constant 0 : i32
    %c0_i32_0 = arith.constant 0 : i32
    %c0_i32_1 = arith.constant 0 : i32
    return %c0_i32, %c0_i32_0 : i32, i32
  }
  func.func @transform_5(%arg0: i32) -> (i32, i32) {
    %c0_i32 = arith.constant 0 : i32
    %c0_i32_0 = arith.constant 0 : i32
    %c0_i32_1 = arith.constant 0 : i32
    return %c0_i32, %c0_i32_0 : i32, i32
  }
  func.func @transform_6(%arg0: i32) -> (i32, i32) {
    %c0_i32 = arith.constant 0 : i32
    %c0_i32_0 = arith.constant 0 : i32
    %c0_i32_1 = arith.constant 0 : i32
    return %c0_i32, %c0_i32_0 : i32, i32
  }
  func.func @transform_7(%arg0: i32) -> (i32, i32) {
    %c0_i32 = arith.constant 0 : i32
    %c0_i32_0 = arith.constant 0 : i32
    %c0_i32_1 = arith.constant 0 : i32
    return %c0_i32, %c0_i32_0 : i32, i32
  }
  func.func @transform_8(%arg0: i32) -> (i32, i32) {
    %c0_i32 = arith.constant 0 : i32
    %c0_i32_0 = arith.constant 0 : i32
    %c0_i32_1 = arith.constant 0 : i32
    return %c0_i32, %c0_i32_0 : i32, i32
  }
  func.func @transform_9(%arg0: i32) -> (i32, i32) {
    %c0_i32 = arith.constant 0 : i32
    %c0_i32_0 = arith.constant 0 : i32
    return %arg0, %c0_i32 : i32, i32
  }
}

</mosaic_0001>

<bundles_post_ra>
// kernel: modified_encoder_block.1
= control target key start
LH: loop header
LB: loop body
LE: loop exit
PB: predicated region body
PF: predicated region fallthrough
CT: control target
= control target key end

     0   :  { %14 = vsyncpa [#allocation4], 0  ;;  %s836_s0 = inlined_call_operand.hbm [shape: f32[16,32], index: 0, kind: input, shape index: {}]   ;;  %s837_s1 = inlined_call_operand.vmem [shape: f32[32,32], index: 1, kind: input, shape index: {}]   ;;  %s838_s2 = inlined_call_operand.vmem [shape: f32[32,32], index: 2, kind: input, shape index: {}]   ;;  %s839_s3 = inlined_call_operand.vmem [shape: f32[32,32], index: 3, kind: input, shape index: {}]   ;;  %s840_s4 = inlined_call_operand.hbm [shape: f32[32,32], index: 4, kind: input, shape index: {}]   ;;  %s841_s5 = inlined_call_operand.hbm [shape: f32[32,64], index: 5, kind: input, shape index: {}]   ;;  %s842_s6 = inlined_call_operand.vmem [shape: f32[1,64], index: 6, kind: input, shape index: {}]   ;;  %s843_s7 = inlined_call_operand.vmem [shape: f32[64,32], index: 7, kind: input, shape index: {}]   ;;  %s844_s8 = inlined_call_operand.hbm [shape: f32[1,32], index: 8, kind: input, shape index: {}]   ;;  %s845_s9 = inlined_call_operand.hbm [shape: f32[16,32], index: 9, kind: output, shape index: {}]  }
   0x1   :  { %15 = vsyncpa [#allocation7], 0 }
   0x2   :  { %16 = vsyncpa [#allocation10], 0 }
   0x3   :  { %17 = vsyncpa [#allocation5], 0  ;;  %s41_s11 = sshll.u32 %s840_s4, 4  ;;  %s667_s12 = smov [#allocation6]   ;;  %s42_s11 = int_to_ptr.hbm [resolvable:$true] %s41_s11 }
   0x4   :  { %s43_s13 = sshll.u32 %s667_s12, 4  ;;  %s22_s16 = sshll.u32 %s836_s0, 4  ;;  %s44_s13 = int_to_ptr.vmem [resolvable:$true] %s43_s13  ;;  %s23_s16 = int_to_ptr.hbm [resolvable:$true] %s22_s16 }
   0x5   :  { %s668_s17 = smov 128   ;;  %s669_s18 = smov 8  }
   0x6   :  { %49 = dma.hbm_to_vmem [thread:$0]  %s42_s11, 512, %s44_s13, [#allocation7], %s668_s17, %s668_s17, %s669_s18  }
   0x7   :  { %s670_s19 = smov [#allocation3]   ;;  %s54_s4 = sshll.u32 %s841_s5, 4  ;;  %s55_s4 = int_to_ptr.hbm [resolvable:$true] %s54_s4 }
   0x8   :  { %s24_s20 = sshll.u32 %s670_s19, 4  ;;  %s72_s24 = sshll.u32 %s844_s8, 4  ;;  %s25_s20 = int_to_ptr.vmem [resolvable:$true] %s24_s20  ;;  %s73_s24 = int_to_ptr.hbm [resolvable:$true] %s72_s24 }
   0x9   :  { %30 = dma.hbm_to_vmem [thread:$0]  %s23_s16, 256, %s25_s20, [#allocation4], %s668_s17, %s668_s17, %s669_s18  }
   0xa   :  { %s671_s25 = smov [#allocation8]   ;;  %s672_s27 = smov [#allocation9]  }
   0xb   :  { %s56_s26 = sshll.u32 %s671_s25, 4  ;;  %s74_s5 = sshll.u32 %s672_s27, 4  ;;  %s57_s26 = int_to_ptr.vmem [resolvable:$true] %s56_s26  ;;  %s75_s5 = int_to_ptr.vmem [resolvable:$true] %s74_s5 }
   0xc   :  { %62 = dma.hbm_to_vmem [thread:$0]  %s55_s4, 512, %s57_s26, [#allocation7], %s668_s17, %s668_s17, %s669_s18  }
   0xd   :  { %77 = dma.hbm_to_vmem [thread:$0]  %s73_s24, 16, %s75_s5, [#allocation10]  }
   0xe   :  { %659 = dma.done.wait [#allocation4], 256  }
   0xf   :  { %660 = vsyncadd [#allocation4], 4294967040 }
  0x10   :  { %661 = dma.done.wait [#allocation7], 1024  }
  0x11   :  { %662 = vsyncadd [#allocation7], 4294966272 }
  0x12   :  { %663 = dma.done.wait [#allocation10], 16  }
  0x13   :  { %664 = vsyncadd [#allocation10], 4294967280  ;;  %v133_v0 = vld [vmem:[%s838_s2 + $0x18] sm:$0xff]  ;;  %v132_v1 = vld [vmem:[%s838_s2 + $0x10] sm:$0xff]  ;;  %vm100_vm0 = vcmask 261120   ;;  %vm216_vm1 = vcmask 64512  }
  0x14   :  { %146 = vmatpush.msra.mxu2 %v133_v0  ;;  %v131_v2 = vld [vmem:[%s838_s2 + $0x8] sm:$0xff]  ;;  %v130_v3 = vld [vmem:[%s838_s2] sm:$0xff]  ;;  %v94_v4 = vld [vmem:[#allocation3] sm:$0xff]  ;;  %vm448_vm2 = vcmask 523264  }
  0x15   :  { %v95_v5 = vld [vmem:[#allocation3 + $0x8] sm:$0xff]  ;;  %v159_v7 = vld [vmem:[%s839_s3 + $0x10] sm:$0xff]  ;;  %v158_v8 = vld [vmem:[%s839_s3 + $0x8] sm:$0xff] }
  0x16   :  { %147 = vmatpush.msra.mxu2 %v132_v1  ;;  %v160_v6 = vld [vmem:[%s839_s3 + $0x18] sm:$0xff]  ;;  %v157_v9 = vld [vmem:[%s839_s3] sm:$0xff]  ;;  %v98_v18 = vld [vmem:[%s837_s1 + $0x10] sm:$0xff] }
  0x17   :  { %v99_v17 = vld [vmem:[%s837_s1 + $0x18] sm:$0xff]  ;;  %v97_v19 = vld [vmem:[%s837_s1 + $0x8] sm:$0xff]  ;;  %v96_v21 = vld [vmem:[%s837_s1] sm:$0xff] }
  0x18   :  { %148 = vmatpush.msra.mxu2 %v131_v2  ;;  %119 = vmatpush.msra.mxu0 %v99_v17  ;;  %v261_v29 = vld [vmem:[#allocation6 + $0x18] sm:$0xff]  ;;  %v260_v30 = vld [vmem:[#allocation6 + $0x10] sm:$0xff]  ;;  %v259_v33 = vld [vmem:[#allocation6 + $0x8] sm:$0xff] }
  0x19   :  { %v258_v36 = vld [vmem:[#allocation6] sm:$0xff]  ;;  %v400_v48 = vld [vmem:[#allocation8 + $0x18] sm:$0xff]  ;;  %v399_v49 = vld [vmem:[#allocation8 + $0x10] sm:$0xff] }
  0x1a   :  { %149 = vmatpush.msra.mxu2 %v130_v3  ;;  %120 = vmatpush.msra.mxu0 %v98_v18  ;;  %v398_v50 = vld [vmem:[#allocation8 + $0x8] sm:$0xff]  ;;  %v397_v51 = vld [vmem:[#allocation8] sm:$0xff]  ;;  %v443_v54 = vld [vmem:[%s843_s7 + $0x38] sm:$0xff] }
  0x1b   :  { %503 = vmatmul.msk.f32.vlgmr.msra.gmra.mxu2 %vm100_vm0, %v94_v4  ;;  %v442_v55 = vld [vmem:[%s843_s7 + $0x30] sm:$0xff]  ;;  %v441_v56 = vld [vmem:[%s843_s7 + $0x28] sm:$0xff]  ;;  %v440_v57 = vld [vmem:[%s843_s7 + $0x20] sm:$0xff] }
  0x1c   :  { %173 = vmatpush.msrb.mxu2 %v160_v6  ;;  %121 = vmatpush.msra.mxu0 %v97_v19  ;;  %v439_v58 = vld [vmem:[%s843_s7 + $0x18] sm:$0xff]  ;;  %v438_v61 = vld [vmem:[%s843_s7 + $0x10] sm:$0xff]  ;;  %v437_v62 = vld [vmem:[%s843_s7 + $0x8] sm:$0xff] }
  0x1d   :  { %v436_v63 = vld [vmem:[%s843_s7] sm:$0xff]  ;;  %s673_s7 = smov [#allocation11]  }
  0x1e   :  { %174 = vmatpush.msrb.mxu2 %v159_v7  ;;  %122 = vmatpush.msra.mxu0 %v96_v21  ;;  %v537_v0 = vld [vmem:[%s842_s6] ss:$0 sm:$0xff]  ;;  %s484_s3 = sshll.u32 %s673_s7, 4  ;;  %s486_s6 = sshll.u32 %s845_s9, 4  ;;  %s485_s3 = int_to_ptr.vmem [resolvable:$true] %s484_s3  ;;  %s487_s6 = int_to_ptr.hbm [resolvable:$true] %s486_s6 }
  0x1f   :  { %501 = vmatmul.msk.f32.vlgmr.msra.gmra.mxu0 %vm100_vm0, %v94_v4  ;;  %v538_v7 = vld [vmem:[#allocation9] ss:$0 sm:$0xff] }
  0x20   :  { %175 = vmatpush.msrb.mxu2 %v158_v8 }
  0x22   :  { %176 = vmatpush.msrb.mxu2 %v157_v9 }
  0x23   :  { %504 = vmatmul.msk.f32.gmra.mxu2 %vm100_vm0, %v95_v5 }
  0x27   :  { %502 = vmatmul.msk.f32.gmra.mxu0 %vm100_vm0, %v95_v5 }
  0x2b   :  { %505 = vmatmul.msk.f32.vlgmr.msrb.gmra.mxu2 %vm100_vm0, %v94_v4 }
  0x33   :  { %506 = vmatmul.msk.f32.gmra.mxu2 %vm100_vm0, %v95_v5 }
  0x9c   :  { %v124_v39 = vpop.f32.mrf.mxu0 }
  0x9e   :  { %v151_v10 = vpop.f32.mrf.mxu2 }
  0x9f   :  { %184 = vxpose.xlu0.b32.start.end [1/1] (short) (narrow) %v151_v10, 32 }
  0xa4   :  { %v127_v47 = vpop.f32.mrf.mxu0 }
  0xa6   :  { %v154_v11 = vpop.f32.mrf.mxu2 }
  0xae   :  { %v178_v12 = vpop.f32.mrf.mxu2 }
  0xaf   :  { %244 = vmatpush.msra.mxu3 %v178_v12 }
  0xb1   :  { %521 = vmatpush.msrb.mxu3 %v443_v54 }
  0xb3   :  { %522 = vmatpush.msrb.mxu3 %v442_v55 }
  0xb5   :  { %523 = vmatpush.msrb.mxu3 %v441_v56 }
  0xb6   :  { %v181_v13 = vpop.f32.mrf.mxu2 }
  0xb7   :  { %349 = vmatpush.msra.mxu1 %v181_v13  ;;  %524 = vmatpush.msrb.mxu3 %v440_v57 }
  0xb9   :  { %463 = vmatpush.msrb.mxu1 %v443_v54  ;;  %525 = vmatpush.msrb.mxu3 %v439_v58 }
  0xbb   :  { %464 = vmatpush.msrb.mxu1 %v442_v55  ;;  %526 = vmatpush.msrb.mxu3 %v438_v61 }
  0xbd   :  { %465 = vmatpush.msrb.mxu1 %v441_v56  ;;  %527 = vmatpush.msrb.mxu3 %v437_v62 }
  0xbf   :  { %290 = vxpose.xlu0.b32.start.end [1/1] (short) (narrow) %v154_v11, 32  ;;  %466 = vmatpush.msrb.mxu1 %v440_v57 }
  0xc0   :  { %528 = vmatpush.msrb.mxu3 %v436_v63 }
  0xc1   :  { %467 = vmatpush.msrb.mxu1 %v439_v58 }
  0xc3   :  { %468 = vmatpush.msrb.mxu1 %v438_v61 }
  0xc5   :  { %469 = vmatpush.msrb.mxu1 %v437_v62 }
  0xc7   :  { %470 = vmatpush.msrb.mxu1 %v436_v63 }
 0x143   :  { %v200_v14 = vpop.trf.xlu0 }
 0x144   :  { %507 = vmatmul.msk.f32.vlgmr.msra.gmra.mxu3 %vm216_vm1, %v200_v14 }
 0x14b   :  { %v201_v15 = vpop.trf.xlu0 }
 0x14c   :  { %508 = vmatmul.msk.f32.gmra.mxu3 %vm216_vm1, %v201_v15 }
 0x153   :  { %v202_v16 = vpop.trf.xlu0 }
 0x154   :  { %509 = vmatmul.msk.f32.gmra.mxu3 %vm216_vm1, %v202_v16 }
 0x15b   :  { %v203_v20 = vpop.trf.xlu0 }
 0x15c   :  { %510 = vmatmul.msk.f32.gmra.mxu3 %vm216_vm1, %v203_v20 }
 0x163   :  { %v306_v22 = vpop.trf.xlu0 }
 0x164   :  { %512 = vmatmul.msk.f32.vlgmr.msra.gmra.mxu1 %vm216_vm1, %v306_v22 }
 0x16b   :  { %v307_v23 = vpop.trf.xlu0 }
 0x16c   :  { %513 = vmatmul.msk.f32.gmra.mxu1 %vm216_vm1, %v307_v23 }
 0x173   :  { %v308_v24 = vpop.trf.xlu0 }
 0x174   :  { %514 = vmatmul.msk.f32.gmra.mxu1 %vm216_vm1, %v308_v24 }
 0x17b   :  { %v309_v25 = vpop.trf.xlu0 }
 0x17c   :  { %515 = vmatmul.msk.f32.gmra.mxu1 %vm216_vm1, %v309_v25 }
 0x1c7   :  { %v246_v26 = vpop.f32.mrf.mxu3 }
 0x1c8   :  { %v262_v38 = vmul.f32 %v258_v36, %v246_v26 }
 0x1cf   :  { %v249_v27 = vpop.f32.mrf.mxu3 }
 0x1d0   :  { %v263_v37 = vmul.f32 %v259_v33, %v249_v27 }
 0x1d7   :  { %v252_v28 = vpop.f32.mrf.mxu3 }
 0x1d8   :  { %v264_v35 = vmul.f32 %v260_v30, %v252_v28 }
 0x1df   :  { %v255_v31 = vpop.f32.mrf.mxu3 }
 0x1e0   :  { %v265_v32 = vmul.f32 %v261_v29, %v255_v31 }
 0x1e1   :  { %v351_v34 = vpop.f32.mrf.mxu1 }
 0x1e2   :  { %281 = vmatpush.msrb.mxu0 %v265_v32  ;;  %v367_v46 = vmul.f32 %v351_v34, %v258_v36 }
 0x1e4   :  { %282 = vmatpush.msrb.mxu0 %v264_v35 }
 0x1e6   :  { %283 = vmatpush.msrb.mxu0 %v263_v37 }
 0x1e8   :  { %284 = vmatpush.msrb.mxu0 %v262_v38 }
 0x1e9   :  { %v354_v40 = vpop.f32.mrf.mxu1  ;;  %511 = vmatmul.msk.f32.vlgmr.msrb.gmra.mxu0 %vm100_vm0, %v124_v39 }
 0x1ea   :  { %v368_v45 = vmul.f32 %v354_v40, %v259_v33  ;;  %423 = vmatpush.msra.mxu0 %v400_v48 }
 0x1ec   :  { %424 = vmatpush.msra.mxu0 %v399_v49 }
 0x1ee   :  { %425 = vmatpush.msra.mxu0 %v398_v50 }
 0x1f0   :  { %426 = vmatpush.msra.mxu0 %v397_v51 }
 0x1f1   :  { %v357_v41 = vpop.f32.mrf.mxu1 }
 0x1f2   :  { %v369_v44 = vmul.f32 %v357_v41, %v260_v30 }
 0x1f9   :  { %v360_v42 = vpop.f32.mrf.mxu1 }
 0x1fa   :  { %v370_v43 = vmul.f32 %v360_v42, %v261_v29 }
 0x1fc   :  { %386 = vmatpush.msra.mxu2 %v370_v43 }
 0x1fe   :  { %387 = vmatpush.msra.mxu2 %v369_v44 }
 0x200   :  { %388 = vmatpush.msra.mxu2 %v368_v45 }
 0x202   :  { %389 = vmatpush.msra.mxu2 %v367_v46 }
 0x203   :  { %516 = vmatmul.msk.f32.vlgmr.msra.gmra.mxu2 %vm100_vm0, %v127_v47 }
 0x266   :  { %v286_v52 = vpop.f32.mrf.mxu0 }
 0x267   :  { %289 = vst.msk [vmem:[#allocation2] sm:$0xff] %vm100_vm0, %v286_v52 }
 0x26e   :  { %v395_v53 = vld [vmem:[#allocation2] sm:$0xff] }
 0x26f   :  { %517 = vmatmul.msk.f32.vlgmr.msra.gmra.mxu0 %vm100_vm0, %v395_v53 }
 0x286   :  { %v391_v59 = vpop.f32.mrf.mxu2 }
 0x287   :  { %394 = vst.msk [vmem:[#allocation2 + $0x8] sm:$0xff] %vm100_vm0, %v391_v59 }
 0x28e   :  { %v396_v60 = vld [vmem:[#allocation2 + $0x8] sm:$0xff] }
 0x28f   :  { %518 = vmatmul.msk.f32.gmra.mxu0 %vm100_vm0, %v396_v60 }
 0x2ec   :  { %v428_v1 = vpop.f32.mrf.mxu0 }
 0x2ed   :  { %v429_v2 = vadd.f32 %v537_v0, %v428_v1 }
 0x2ef   :  { %v434_v3 = vmax.f32 %v429_v2, 0.0 }
 0x2f1   :  { %519 = vmatmul.msk.f32.vlgmr.msrb.gmra.mxu1 %vm448_vm2, %v434_v3 }
 0x30c   :  { %v431_v4 = vpop.f32.mrf.mxu0 }
 0x30d   :  { %v432_v5 = vadd.f32 %v537_v0, %v431_v4 }
 0x30f   :  { %v435_v6 = vmax.f32 %v432_v5, 0.0 }
 0x311   :  { %520 = vmatmul.msk.f32.vlgmr.msrb.gmra.mxu3 %vm448_vm2, %v435_v6 }
 0x36e   :  { %v472_v8 = vpop.f32.mrf.mxu1 }
 0x36f   :  { %v473_v9 = vadd.f32 %v538_v7, %v472_v8 }
 0x371   :  { %478 = vst.msk [vmem:[#allocation11] sm:$0xff] %vm100_vm0, %v473_v9 }
 0x394   :  { %v475_v10 = vpop.f32.mrf.mxu3 }
 0x395   :  { %v476_v11 = vadd.f32 %v538_v7, %v475_v10 }
 0x397   :  { %479 = vst.msk [vmem:[#allocation11 + $0x8] sm:$0xff] %vm100_vm0, %v476_v11 }
 0x398   :  { %492 = dma.vmem_to_hbm [thread:$0]  %s485_s3, 256, %s487_s6, [#allocation5], %s668_s17, %s668_s17, %s669_s18  }
 0x399   :  { %665 = dma.done.wait [#allocation5], 256  }
 0x39a   :  { %666 = vsyncadd [#allocation5], 4294967040 }
 0x39b   :  { %497 = vsyncpa [#allocation4], 1 }
 0x39c   :  { %498 = vsyncpa [#allocation7], 1 }
 0x39d   :  { %499 = vsyncpa [#allocation10], 1 }
 0x39e   :  { %500 = vsyncpa [#allocation5], 1 }

</bundles_post_ra>
